<compile_context>
chip_gen: v7x
topology: tpu7x:2x2x1
jax: 0.10.0
libtpu: 0.0.40
codegen_flags: <defaults>
</compile_context>

<pallas_src>
import functools

import jax
import jax.numpy as jnp
from jax import lax
from jax.experimental import pallas as pl
from jax.experimental.pallas import tpu as pltpu

EPS = 1e-5
_MiB = 1024 * 1024


def _round_up(a, b):
    return (a + b - 1) // b * b


def _largest_divisor(n, cap, quantum):
    """Largest d <= cap with d % quantum == 0 and n % d == 0 (requires n % quantum == 0)."""
    best = quantum
    d = quantum
    top = min(cap, n)
    while d <= top:
        if n % d == 0:
            best = d
        d += quantum
    return best


def _vmem_limit_bytes():
    """Per-core VMEM budget: conservative on v7x (64 MiB/TC), larger on v5e/v6e (128 MiB)."""
    cap = 64 * _MiB  # conservative default: v7x per-TensorCore VMEM
    try:
        info = pltpu.get_tpu_info()
        cap = int(getattr(info, "vmem_capacity_bytes", cap) or cap)
    except Exception:
        pass
    return max(32 * _MiB, min(cap - 16 * _MiB, 96 * _MiB))


# -------------------------------------------------------------------- fused single pass
def _fused_kernel(x_ref, w_ref, o_ref, *, s_true, s_chunk):
    """Per-batch fused InstanceNorm + ReLU + 1x1x1 conv; x stays resident in VMEM.

    The chunk loop is statically unrolled (n_chunks is kept small by construction), so
    every slice is static/tile-aligned and temporaries stay bounded at (c_pad, s_chunk).
    """
    c_pad, s_pad = x_ref.shape
    n_chunks = s_pad // s_chunk
    inv_s = 1.0 / float(s_true)

    def chunk(i):
        return x_ref[:, i * s_chunk:(i + 1) * s_chunk].astype(jnp.float32)

    # Pass 1: per-channel mean. Spatial padding is zero-filled, so plain sums are exact.
    total = jnp.zeros((c_pad, 1), jnp.float32)
    for i in range(n_chunks):
        total = total + jnp.sum(chunk(i), axis=-1, keepdims=True)
    mean = total * inv_s

    # Pass 2: centered second moment. Each zero-padded lane contributed (0 - mean)^2,
    # so subtract the analytic correction instead of masking with iota/select.
    m2 = jnp.zeros((c_pad, 1), jnp.float32)
    for i in range(n_chunks):
        d = chunk(i) - mean
        m2 = m2 + jnp.sum(d * d, axis=-1, keepdims=True)
    m2 = m2 - float(s_pad - s_true) * (mean * mean)
    rstd = lax.rsqrt(jnp.maximum(m2 * inv_s, 0.0) + EPS)      # biased var, like torch

    # Pass 3: normalize + ReLU + channel-mixing matmul (MXU), chunk by chunk.
    w = w_ref[...]                                            # (F, c_pad), matmul dtype
    for i in range(n_chunks):
        h = (jnp.maximum(chunk(i) - mean, 0.0) * rstd).astype(w.dtype)
        o_ref[:, i * s_chunk:(i + 1) * s_chunk] = jnp.dot(
            w, h, preferred_element_type=jnp.float32).astype(o_ref.dtype)


# ------------------------------------------------------------------- two-phase: phase 1
def _stats_kernel(x_ref, mean_ref, rstd_ref, m2_ref, *, s_true, s_tile):
    """Per-(n, c) mean / rstd over the spatial axis via Chan's parallel merge."""
    s = pl.program_id(2)
    n_s = pl.num_programs(2)

    @pl.when(s == 0)
    def _():
        mean_ref[...] = jnp.zeros_like(mean_ref)
        m2_ref[...] = jnp.zeros_like(m2_ref)

    x = x_ref[...].astype(jnp.float32)                        # (c_tile, s_tile)
    start = s * s_tile

    # Only the last tile can be partial and its padded lanes are zero, so the plain sums
    # are exact; the centered M2 only needs the analytic n_pad * m_b^2 correction
    # (each zero lane contributed (0 - m_b)^2).  No iota / select masking needed.
    n_b = jnp.minimum(s_tile, s_true - start).astype(jnp.float32)
    pad_b = float(s_tile) - n_b
    m_b = jnp.sum(x, axis=-1, keepdims=True) / n_b            # (c_tile, 1)
    d = x - m_b
    m2_b = jnp.sum(d * d, axis=-1, keepdims=True) - pad_b * (m_b * m_b)

    # Chan merge with the running (mean, M2). All prior tiles are full, so the running
    # count is exactly `start` (works for start == 0 too).
    n_a = start.astype(jnp.float32)
    n_ab = n_a + n_b
    mean_a = mean_ref[...]
    delta = m_b - mean_a
    mean_ref[...] = mean_a + delta * (n_b / n_ab)
    m2_ref[...] = m2_ref[...] + m2_b + delta * delta * (n_a * n_b / n_ab)

    @pl.when(s == n_s - 1)
    def _():
        var = jnp.maximum(m2_ref[...] * (1.0 / s_true), 0.0)  # biased, like InstanceNorm
        rstd_ref[...] = lax.rsqrt(var + EPS)


# ------------------------------------------------------------------- two-phase: phase 2
def _conv_kernel(x_ref, mean_ref, w_ref, o_ref):
    """y = (rstd-scaled W) @ ReLU(x - mean); full-C contraction per (batch, S-tile)."""
    x = x_ref[...].astype(jnp.float32)                        # (c_pad, s_tile)
    h = jnp.maximum(x - mean_ref[...], 0.0).astype(w_ref.dtype)
    o_ref[...] = jnp.dot(w_ref[...], h,
                         preferred_element_type=jnp.float32).astype(o_ref.dtype)


# ----------------------------------------------------------------------------- wrapper
def in_ac_conv3d(x, weight, *, matmul_dtype=jnp.bfloat16, fused=None,
                 s_tile_phase1_max=4096, s_tile_phase2_max=2048, c_tile_stats_max=256):
    """x: (N, C, D, H, W); weight: (F, C, 1, 1, 1)  ->  y: (N, F, D, H, W).

    matmul_dtype: dtype of the MXU operands (accumulation is always f32).  bf16 default
    per the perf review; pass jnp.float32 for exact f32 conv semantics.
    """
    N, C, D, H, W = x.shape
    F = weight.shape[0]
    assert weight.shape[1:] == (C, 1, 1, 1), "only 1x1x1, groups=1 conv is implemented"
    assert s_tile_phase1_max % 128 == 0 and s_tile_phase2_max % 128 == 0
    assert c_tile_stats_max % 8 == 0
    S = D * H * W

    out_dtype = x.dtype
    x_bytes = jnp.dtype(x.dtype).itemsize
    out_bytes = jnp.dtype(out_dtype).itemsize
    mm_bytes = jnp.dtype(matmul_dtype).itemsize

    x2 = x.reshape(N, C, S)
    w2 = weight.reshape(F, C).astype(jnp.float32)

    # Channel padding to a sublane multiple.  Padded channels are all-zero in x (so
    # ReLU(0 - 0) == 0) *and* get zero weight columns; they never contribute even though
    # their rstd is 1/sqrt(eps).  Do not change one of these invariants without the other.
    c_pad = _round_up(C, 8)

    vmem_limit = _vmem_limit_bytes()
    budget = vmem_limit - 6 * _MiB

    # ---------------------------------------------------- fused single-pass eligibility
    s_pad_f = _round_up(S, 128)
    chunk_cap = min(1024, max(128, ((4 * _MiB) // (c_pad * 12)) // 128 * 128))
    s_chunk = _largest_divisor(s_pad_f, cap=chunk_cap, quantum=128)
    n_chunks_f = s_pad_f // s_chunk
    fused_fp = (2 * c_pad * s_pad_f * x_bytes            # x slab, double-buffered over N
                + 2 * F * s_pad_f * out_bytes            # output slab
                + 2 * F * c_pad * mm_bytes               # resident weight
                + 2 * (c_pad * s_chunk * (8 + mm_bytes) + F * s_chunk * 4))  # temporaries
    if fused is None:
        fused = (fused_fp <= budget) and (n_chunks_f <= 64)

    if fused:
        xp = x2 if (c_pad == C and s_pad_f == S) else jnp.pad(
            x2, ((0, 0), (0, c_pad - C), (0, s_pad_f - S)))
        wp = w2 if c_pad == C else jnp.pad(w2, ((0, 0), (0, c_pad - C)))
        wp = wp.astype(matmul_dtype)
        y2 = pl.pallas_call(
            functools.partial(_fused_kernel, s_true=S, s_chunk=s_chunk),
            out_shape=jax.ShapeDtypeStruct((N, F, s_pad_f), out_dtype),
            grid_spec=pltpu.PrefetchScalarGridSpec(
                num_scalar_prefetch=0,
                grid=(N,),
                in_specs=[
                    pl.BlockSpec((None, c_pad, s_pad_f), lambda n: (n, 0, 0)),
                    pl.BlockSpec((F, c_pad), lambda n: (0, 0)),          # resident weight
                ],
                out_specs=pl.BlockSpec((None, F, s_pad_f), lambda n: (n, 0, 0)),
            ),
            compiler_params=pltpu.CompilerParams(
                dimension_semantics=("parallel",), vmem_limit_bytes=vmem_limit),
        )(xp, wp)
        if s_pad_f != S:
            y2 = y2[:, :, :S]
        return y2.reshape(N, F, D, H, W)

    # ------------------------------------------------------------------ two-phase path
    # Phase-2 spatial tile (lane axis of the output) first; phase-1 tile is a multiple
    # of it so both phases can share the same padded x.
    s2_tile = min(_round_up(S, 128), s_tile_phase2_max)

    def _p2_footprint(st):
        return (2 * c_pad * st * x_bytes                       # x tile (double-buffered)
                + 2 * F * st * out_bytes                       # output tile
                + c_pad * st * (4 + mm_bytes)                  # (x - mean) / h temporaries
                + 2 * (F * c_pad * mm_bytes + c_pad * 4))      # resident weight + mean

    while _p2_footprint(s2_tile) > budget and s2_tile > 128:
        s2_tile = max(128, (s2_tile // 2) // 128 * 128)

    c_tile1 = _largest_divisor(c_pad, cap=c_tile_stats_max, quantum=8)
    mult = max(1, min(s_tile_phase1_max // s2_tile, pl.cdiv(S, s2_tile)))

    def _p1_footprint(m):
        return 4 * c_tile1 * (s2_tile * m) * max(x_bytes, 4)

    while _p1_footprint(mult) > budget and mult > 1:
        mult = max(1, mult // 2)
    s1_tile = s2_tile * mult

    s_pad = _round_up(S, s1_tile)
    n_s1 = s_pad // s1_tile
    n_s2 = s_pad // s2_tile
    n_c1 = c_pad // c_tile1

    xp = x2 if (c_pad == C and s_pad == S) else jnp.pad(
        x2, ((0, 0), (0, c_pad - C), (0, s_pad - S)))
    wp = w2 if c_pad == C else jnp.pad(w2, ((0, 0), (0, c_pad - C)))

    # ---- phase 1: per-(n, c) mean / rstd, one streaming pass over x ------------------
    mean, rstd = pl.pallas_call(
        functools.partial(_stats_kernel, s_true=S, s_tile=s1_tile),
        out_shape=(
            jax.ShapeDtypeStruct((N, c_pad, 1), jnp.float32),
            jax.ShapeDtypeStruct((N, c_pad, 1), jnp.float32),
        ),
        grid_spec=pltpu.PrefetchScalarGridSpec(
            num_scalar_prefetch=0,
            grid=(N, n_c1, n_s1),
            in_specs=[
                pl.BlockSpec((None, c_tile1, s1_tile), lambda n, c, s: (n, c, s)),
            ],
            out_specs=(
                pl.BlockSpec((None, c_tile1, 1), lambda n, c, s: (n, c, 0)),
                pl.BlockSpec((None, c_tile1, 1), lambda n, c, s: (n, c, 0)),
            ),
            scratch_shapes=[pltpu.VMEM((c_tile1, 1), jnp.float32)],
        ),
        compiler_params=pltpu.CompilerParams(
            dimension_semantics=("parallel", "parallel", "arbitrary"),
            vmem_limit_bytes=vmem_limit),
    )(xp)

    # Fold rstd into a per-batch scaled weight: ReLU((x-m)*r) == r*ReLU(x-m) since r > 0.
    # O(N*F*C) wrapper op; keeps phase 2 free of any per-voxel rstd multiply.  Padded
    # channels keep zero weight columns (their rstd is 1/sqrt(eps) but never used).
    w_scaled = (wp[None, :, :] * rstd[:, :, 0][:, None, :]).astype(matmul_dtype)

    # ---- phase 2: normalize + ReLU + channel matmul; full-C contraction per step -----
    y2 = pl.pallas_call(
        _conv_kernel,
        out_shape=jax.ShapeDtypeStruct((N, F, s_pad), out_dtype),
        grid_spec=pltpu.PrefetchScalarGridSpec(
            num_scalar_prefetch=0,
            grid=(N, n_s2),
            in_specs=[
                pl.BlockSpec((None, c_pad, s2_tile), lambda n, s: (n, 0, s)),
                # mean and the scaled weight stay VMEM-resident for a whole batch:
                # their block index is independent of the spatial grid axis.
                pl.BlockSpec((None, c_pad, 1), lambda n, s: (n, 0, 0)),
                pl.BlockSpec((None, F, c_pad), lambda n, s: (n, 0, 0)),
            ],
            out_specs=pl.BlockSpec((None, F, s2_tile), lambda n, s: (n, 0, s)),
        ),
        compiler_params=pltpu.CompilerParams(
            dimension_semantics=("parallel", "parallel"),
            vmem_limit_bytes=vmem_limit),
    )(xp, mean, w_scaled)

    if s_pad != S:
        y2 = y2[:, :, :S]
    return y2.reshape(N, F, D, H, W)


# ----------------------------------------------------------------------------- reference
def _reference(x, weight):
    mean = jnp.mean(x, axis=(2, 3, 4), keepdims=True)
    var = jnp.var(x, axis=(2, 3, 4), keepdims=True)  # biased, like InstanceNorm3d
    h = jnp.maximum((x - mean) / jnp.sqrt(var + EPS), 0.0)
    w2 = weight.reshape(weight.shape[0], weight.shape[1])
    return jnp.einsum("fc,ncdhw->nfdhw", w2, h)


def _make_inputs(key, N, C, F, D, H, W):
    kx, kw = jax.random.split(key)
    x = jax.random.normal(kx, (N, C, D, H, W), dtype=jnp.float32)
    fan_in = C
    weight = jax.random.uniform(
        kw, (F, C, 1, 1, 1), dtype=jnp.float32,
        minval=-1.0 / jnp.sqrt(fan_in), maxval=1.0 / jnp.sqrt(fan_in))
    return x, weight


if __name__ == "__main__":
    key = jax.random.PRNGKey(0)
    k1, k2, k3, k4 = jax.random.split(key, 4)

    # Test 1: fused single-pass path, exact f32 matmul, no padding (S = 256).
    x1, w1 = _make_inputs(k1, N=2, C=4, F=8, D=4, H=8, W=8)
    y1 = jax.block_until_ready(in_ac_conv3d(x1, w1, matmul_dtype=jnp.float32))
    r1 = _reference(x1, w1)
    assert y1.shape == (2, 8, 4, 8, 8)
    assert jnp.allclose(y1, r1, atol=1e-4, rtol=1e-4), "test 1 (fused, f32) mismatch"

    # Test 2: fused path, f32 matmul, exercising spatial (192 -> 256) and channel
    # (12 -> 16) zero-padding and the analytic pad correction in the stats.
    x2, w2 = _make_inputs(k2, N=1, C=12, F=8, D=3, H=8, W=8)
    y2 = jax.block_until_ready(in_ac_conv3d(x2, w2, matmul_dtype=jnp.float32))
    r2 = _reference(x2, w2)
    assert y2.shape == (1, 8, 3, 8, 8)
    assert jnp.allclose(y2, r2, atol=1e-4, rtol=1e-4), "test 2 (fused, padded) mismatch"

    # Test 3: fused path with the default bf16 matmul operands and multiple spatial
    # chunks (S = 2048 -> two 1024-lane chunks).  Looser tolerance: bf16 input rounding.
    x3, w3 = _make_inputs(k3, N=2, C=8, F=8, D=4, H=16, W=32)
    y3 = jax.block_until_ready(in_ac_conv3d(x3, w3))
    r3 = _reference(x3, w3)
    assert jnp.allclose(y3, r3, atol=5e-2, rtol=5e-2), "test 3 (fused, bf16) mismatch"

    # Test 4: forced two-phase path, default bf16 matmul: channel-tiled stats
    # (C = 256 -> two 128-channel tiles), Chan merge across two spatial tiles plus the
    # partial-last-tile correction (S = 192 -> 256), two phase-2 spatial tiles.
    x4, w4 = _make_inputs(k4, N=2, C=256, F=16, D=3, H=8, W=8)
    y4 = jax.block_until_ready(in_ac_conv3d(
        x4, w4, fused=False, c_tile_stats_max=128,
        s_tile_phase1_max=128, s_tile_phase2_max=128))
    r4 = _reference(x4, w4)
    assert y4.shape == (2, 16, 3, 8, 8)
    assert jnp.allclose(y4, r4, atol=5e-2, rtol=5e-2), "test 4 (two-phase, bf16) mismatch"

    # Test 5: forced two-phase path with f32 matmul (tight tolerance) and channel
    # padding only (C = 12 -> 16, single stats tile with the pad correction).
    x5, w5 = _make_inputs(k1, N=2, C=12, F=8, D=3, H=8, W=8)
    y5 = jax.block_until_ready(in_ac_conv3d(
        x5, w5, fused=False, matmul_dtype=jnp.float32, s_tile_phase2_max=128))
    r5 = _reference(x5, w5)
    assert jnp.allclose(y5, r5, atol=1e-4, rtol=1e-4), "test 5 (two-phase, f32) mismatch"

    print("KERNEL_OK")
</pallas_src>

<mosaic_0001>
module attributes {stable_mosaic.version = 11 : i64} {
  func.func @_fused_kernel(%arg0: i32, %arg1: memref<1x8x256xf32, #tpu.memory_space<vmem>>, %arg2: memref<8x8xf32, #tpu.memory_space<vmem>>, %arg3: memref<1x8x256xf32, #tpu.memory_space<vmem>>) attributes {dimension_semantics = [#tpu.dimension_semantics<parallel>], iteration_bounds = array<i64: 2>, scalar_prefetch = 0 : i64, scratch_operands = 0 : i64, tpu.core_type = #tpu.core_type<tc>, window_params = [{transform_indices = @transform_0, window_bounds = array<i64: 1, 8, 256>}, {pipeline_mode = #tpu.pipeline_mode<synchronous>, transform_indices = @transform_1, window_bounds = array<i64: 8, 8>}, {transform_indices = @transform_2, window_bounds = array<i64: 1, 8, 256>}]} {
    %cst = arith.constant 0.000000e+00 : f32
    %0 = vector.broadcast %cst : f32 to vector<8x1xf32>
    %c0 = arith.constant 0 : index
    %c0_0 = arith.constant 0 : index
    %c0_1 = arith.constant 0 : index
    %1 = vector.load %arg1[%c0, %c0_0, %c0_1] : memref<1x8x256xf32, #tpu.memory_space<vmem>>, vector<1x8x256xf32>
    %2 = vector.shape_cast %1 : vector<1x8x256xf32> to vector<8x256xf32>
    %cst_2 = arith.constant dense<0.000000e+00> : vector<8xf32>
    %3 = vector.multi_reduction <add>, %2, %cst_2 [1] : vector<8x256xf32> to vector<8xf32>
    %4 = vector.shape_cast %3 : vector<8xf32> to vector<8x1xf32>
    %5 = arith.addf %0, %4 : vector<8x1xf32>
    %cst_3 = arith.constant 3.906250e-03 : f32
    %6 = vector.broadcast %cst_3 : f32 to vector<8x1xf32>
    %7 = arith.mulf %5, %6 : vector<8x1xf32>
    %cst_4 = arith.constant 0.000000e+00 : f32
    %8 = vector.broadcast %cst_4 : f32 to vector<8x1xf32>
    %c0_5 = arith.constant 0 : index
    %c0_6 = arith.constant 0 : index
    %c0_7 = arith.constant 0 : index
    %9 = vector.load %arg1[%c0_5, %c0_6, %c0_7] : memref<1x8x256xf32, #tpu.memory_space<vmem>>, vector<1x8x256xf32>
    %10 = vector.shape_cast %9 : vector<1x8x256xf32> to vector<8x256xf32>
    %11 = vector.broadcast %7 : vector<8x1xf32> to vector<8x256xf32>
    %12 = arith.subf %10, %11 : vector<8x256xf32>
    %13 = arith.mulf %12, %12 : vector<8x256xf32>
    %cst_8 = arith.constant dense<0.000000e+00> : vector<8xf32>
    %14 = vector.multi_reduction <add>, %13, %cst_8 [1] : vector<8x256xf32> to vector<8xf32>
    %15 = vector.shape_cast %14 : vector<8xf32> to vector<8x1xf32>
    %16 = arith.addf %8, %15 : vector<8x1xf32>
    %17 = arith.mulf %7, %7 : vector<8x1xf32>
    %cst_9 = arith.constant 0.000000e+00 : f32
    %18 = vector.broadcast %cst_9 : f32 to vector<8x1xf32>
    %19 = arith.mulf %18, %17 : vector<8x1xf32>
    %20 = arith.subf %16, %19 : vector<8x1xf32>
    %cst_10 = arith.constant 3.906250e-03 : f32
    %21 = vector.broadcast %cst_10 : f32 to vector<8x1xf32>
    %22 = arith.mulf %20, %21 : vector<8x1xf32>
    %cst_11 = arith.constant 0.000000e+00 : f32
    %23 = vector.broadcast %cst_11 : f32 to vector<8x1xf32>
    %24 = arith.maximumf %22, %23 : vector<8x1xf32>
    %cst_12 = arith.constant 9.99999974E-6 : f32
    %25 = vector.broadcast %cst_12 : f32 to vector<8x1xf32>
    %26 = arith.addf %24, %25 : vector<8x1xf32>
    %27 = math.rsqrt %26 : vector<8x1xf32>
    %c0_13 = arith.constant 0 : index
    %c0_14 = arith.constant 0 : index
    %28 = vector.load %arg2[%c0_13, %c0_14] : memref<8x8xf32, #tpu.memory_space<vmem>>, vector<8x8xf32>
    %c0_15 = arith.constant 0 : index
    %c0_16 = arith.constant 0 : index
    %c0_17 = arith.constant 0 : index
    %29 = vector.load %arg1[%c0_15, %c0_16, %c0_17] : memref<1x8x256xf32, #tpu.memory_space<vmem>>, vector<1x8x256xf32>
    %30 = vector.shape_cast %29 : vector<1x8x256xf32> to vector<8x256xf32>
    %31 = vector.broadcast %7 : vector<8x1xf32> to vector<8x256xf32>
    %32 = arith.subf %30, %31 : vector<8x256xf32>
    %cst_18 = arith.constant 0.000000e+00 : f32
    %33 = vector.broadcast %cst_18 : f32 to vector<8x256xf32>
    %34 = arith.maximumf %32, %33 : vector<8x256xf32>
    %35 = vector.broadcast %27 : vector<8x1xf32> to vector<8x256xf32>
    %36 = arith.mulf %34, %35 : vector<8x256xf32>
    %cst_19 = arith.constant dense<0.000000e+00> : vector<8x256xf32>
    %37 = tpu.matmul %28, %36, %cst_19 {dimension_numbers = #tpu.dot_dimension_numbers<[1], [0], [0], [1], [0, 0, 1, 1], [], []>} : vector<8x8xf32>, vector<8x256xf32>, vector<8x256xf32> -> vector<8x256xf32>
    %c0_20 = arith.constant 0 : index
    %c0_21 = arith.constant 0 : index
    %c0_22 = arith.constant 0 : index
    %38 = vector.load %arg3[%c0_20, %c0_21, %c0_22] : memref<1x8x256xf32, #tpu.memory_space<vmem>>, vector<1x8x256xf32>
    %39 = vector.shape_cast %38 : vector<1x8x256xf32> to vector<8x256xf32>
    %40 = vector.shape_cast %37 : vector<8x256xf32> to vector<1x8x256xf32>
    tpu.vector_store %arg3[%c0_20, %c0_21, %c0_22], %40 {strides = array<i32>} : memref<1x8x256xf32, #tpu.memory_space<vmem>>, vector<1x8x256xf32>,
    return
  }
  func.func @transform_0(%arg0: i32) -> (i32, i32, i32) {
    %c0_i32 = arith.constant 0 : i32
    %c0_i32_0 = arith.constant 0 : i32
    %c0_i32_1 = arith.constant 0 : i32
    return %arg0, %c0_i32, %c0_i32_0 : i32, i32, i32
  }
  func.func @transform_1(%arg0: i32) -> (i32, i32) {
    %c0_i32 = arith.constant 0 : i32
    %c0_i32_0 = arith.constant 0 : i32
    %c0_i32_1 = arith.constant 0 : i32
    return %c0_i32, %c0_i32_0 : i32, i32
  }
  func.func @transform_2(%arg0: i32) -> (i32, i32, i32) {
    %c0_i32 = arith.constant 0 : i32
    %c0_i32_0 = arith.constant 0 : i32
    %c0_i32_1 = arith.constant 0 : i32
    return %arg0, %c0_i32, %c0_i32_0 : i32, i32, i32
  }
}

</mosaic_0001>

<bundles_post_ra>
// kernel: tpu_custom_call.1
= control target key start
LH: loop header
LB: loop body
LE: loop exit
PB: predicated region body
PF: predicated region fallthrough
CT: control target
= control target key end

     0   :  { %7 = vsyncpa [#allocation3], 0  ;;  %s805_s0 = inlined_call_operand.hbm [shape: f32[2,8,256], index: 0, kind: input, shape index: {}]   ;;  %s806_s1 = inlined_call_operand.hbm [shape: f32[8,8], index: 1, kind: input, shape index: {}]   ;;  %s807_s2 = inlined_call_operand.hbm [shape: f32[2,8,256], index: 2, kind: output, shape index: {}]  }
   0x1   :  { %9 = vsyncpa [#allocation3 + $0x1], 0 }
   0x2   :  { %10 = vsyncpa [#allocation6], 0 }
   0x3   :  { %11 = vsyncpa [#allocation4], 0 }
   0x4   :  { %13 = vsyncpa [#allocation4 + $0x1], 0  ;;  %s600_s9 = smov 0   ;;  %s602_s10 = smov 0  }
   0x5   :  { %s604_s11 = smov 0   ;;  %s606_s12 = smov 0  }
   0x6 LB: > { %s621_s13 = sadd.s32 4294967295, %s579_s12   ;;  %s372_s14 = sadd.s32 4294967294, %s579_s12   ;;  %s579_s12 = sphi %s606_s12, %s831_s12   ;;  %s575_s11 = sphi %s604_s11, %s830_s11   ;;  %s571_s10 = sphi %s602_s10, %s829_s10   ;;  %s567_s9 = sphi %s600_s9, %s828_s9  }
   0x7   : > { %p39_p0 = scmp.ne.s32.totalorder %s571_s10, %s567_s9  ;;  %p808_p1 = scmp.eq.s32.totalorder %s621_s13, 0 }
   0x8   : > { %p90_p3 = scmp.eq.s32.totalorder %s372_s14, 1  ;;  %p373_p5 = scmp.ge.s32.totalorder %s579_s12, 1 }
   0x9   : > { %p630_p4 = por %p808_p1, %p39_p0  ;;  %p97_p7 = scmp.lt.s32.totalorder %s579_s12, 3 }
   0xa   : > { %p635_p6 = por %p90_p3, %p39_p0  ;;  %s581_s18 = smov [#allocation5]  }
   0xb   : > { %s811_s15 = scalar_select %p630_p4, 1, 0 }
   0xc   : > { %s812_s16 = scalar_select %p635_p6, 1, 0 }
   0xd   : > { %p640_p8 = pnand %p373_p5, %p97_p7  ;;  %s110_s19 = sshll.u32 %s581_s18, 4  ;;  %s111_s19 = int_to_ptr.vmem [resolvable:$true] %s110_s19 }
   0xe   : > { %s648_s20 = sadd.s32 1, %s579_s12   ;;  %s26_s24 = sadd.s32 1, %s575_s11 }
   0xf   : > { %s813_s17 = scalar_select %p640_p8, 1, 0 }
  0x10   : > { %p399_p10 = pneg %p640_p8  ;;  %s23_s22 = ssub.s32 %s579_s12, %s648_s20 }
  0x11   : > { %p658_p12 = scmp.eq.s32.totalorder %s23_s22, 0  ;;  %s451_s27 = scalar_lea.hbm %s806_s1, 128 }
  0x12   : > { %p652_p11 = pnand %p399_p10, %p808_p1  ;;  %p452_p0 = scmp.ne.s32.totalorder %s806_s1, %s451_s27 }
  0x13   : > { %s815_s23 = scalar_select %p658_p12, 1, 0 }
  0x14   : > { %p453_p3 = pneg %p652_p11  ;;  %p458_p10 = scmp.lt.u32.totalorder %s451_s27, %s806_s1 }
  0x16   : > { %p454_p5 = pnand %p453_p3, %p452_p0 }
  0x18   : > { %p455_p7 = pneg %p454_p5 }
  0x1a   : > { %p460_p9 = pnand %p458_p10, %p455_p7 }
  0x1c   : > { %463 = shalt.err (!%p460_p9)
}
  0x1d   : > { %s464_s4 = scalar_lea.vmem %s111_s19, 128  ;;  %p472_p6 = scmp.lt.s32.totalorder %s111_s19, %s111_s19 }
  0x1e   : > { %p465_p1 = scmp.ne.s32.totalorder %s111_s19, %s464_s4  ;;  %p473_p4 = scmp.lt.s32.totalorder %s464_s4, %s464_s4 }
  0x20   : > { %p467_p2 = pnand %p465_p1, %p453_p3  ;;  %p474_p8 = por %p473_p4, %p472_p6 }
  0x22   : > { %p468_p13 = pneg %p467_p2 }
  0x24   : > { %p475_p12 = pnand %p474_p8, %p468_p13 }
  0x26   : > { %478 = shalt.err (!%p475_p12)
}
  0x27   : > { %402 = dma.hbm_to_vmem [thread:$0]  (!%p652_p11), %s806_s1, 128, %s111_s19, [#allocation6]  }
  0x28   : > { %p816_p1 = scmp.ne.s32.totalorder %s815_s23, 0  ;;  %p34_p2 = scmp.eq.s32.totalorder %s579_s12, 0 }
  0x29   : > { %p817_p4 = scmp.ne.s32.totalorder %s575_s11, %s571_s10  ;;  %p818_p6 = scmp.eq.s32.totalorder %s621_s13, 1 }
  0x2a   : > { %s684_s7 = scalar_select %p816_p1, %s575_s11, %s26_s24  }
  0x2b   : > { %p692_p8 = por %p818_p6, %p817_p4  ;;  %p412_p9 = scmp.lt.s32.totalorder %s579_s12, 2 }
  0x2c   : > { %s121_s14 = sand.u32 1, %s575_s11   ;;  %p820_p12 = pmov %p817_p4 }
  0x2d   : > { %s376_s18 = sshll.u32 %s121_s14, 4  ;;  %s389_s21 = sshll.u32 %s579_s12, 8 }
  0x2e   : > { %p35_p13 = por %p34_p2, %p820_p12  ;;  %s705_s19 = scalar_lea.hbm %s805_s0, %s389_s21 }
  0x2f   : > { %s125_s23 = scalar_lea.vmem [#allocation2], %s376_s18  ;;  %s122_s27 = scalar_lea.sflag [#allocation3], %s121_s14 }
  0x30   : > { %s133_s24 = sshll.u32 %s125_s23, 4  ;;  %p707_p11 = pnand %p412_p9, %p35_p13  ;;  %s711_s24 = int_to_ptr.vmem [resolvable:$true] %s133_s24 }
  0x31   : > { %s479_s28 = scalar_lea.hbm %s705_s19, 256  ;;  %s484_s3 = scalar_lea.hbm %s805_s0, 512 }
  0x32   : > { %p480_p0 = scmp.ne.s32.totalorder %s705_s19, %s479_s28  ;;  %p481_p3 = pneg %p707_p11 }
  0x33   : > { %p485_p10 = scmp.lt.u32.totalorder %s705_s19, %s805_s0  ;;  %p486_p1 = scmp.lt.u32.totalorder %s484_s3, %s479_s28 }
  0x34   : > { %p482_p5 = pnand %p481_p3, %p480_p0  ;;  %p488_p4 = scmp.lt.u32.totalorder %s479_s28, %s705_s19 }
  0x35   : > { %p487_p2 = por %p486_p1, %p485_p10 }
  0x36   : > { %p483_p7 = pneg %p482_p5 }
  0x37   : > { %p489_p6 = por %p488_p4, %p487_p2 }
  0x39   : > { %p490_p9 = pnand %p489_p6, %p483_p7 }
  0x3b   : > { %493 = shalt.err (!%p490_p9)
}
  0x3c   : > { %s494_s6 = scalar_lea.vmem %s711_s24, 256  ;;  %s582_s14 = smov [#allocation2]  }
  0x3d   : > { %p495_p12 = scmp.ne.s32.totalorder %s711_s24, %s494_s6  ;;  %s499_s18 = sshll.u32 %s582_s14, 4  ;;  %s500_s18 = int_to_ptr.vmem [resolvable:$false] %s499_s18 }
  0x3e   : > { %s501_s21 = scalar_lea.vmem %s500_s18, 512  ;;  %p502_p5 = scmp.lt.s32.totalorder %s711_s24, %s500_s18 }
  0x3f   : > { %p497_p13 = pnand %p495_p12, %p481_p3  ;;  %p503_p10 = scmp.lt.s32.totalorder %s501_s21, %s494_s6 }
  0x41   : > { %p498_p0 = pneg %p497_p13  ;;  %p504_p1 = por %p503_p10, %p502_p5 }
  0x43   : > { %p505_p2 = pnand %p504_p1, %p498_p0 }
  0x45   : > { %508 = shalt.err (!%p505_p2)
}
  0x46   : > { %406 = dma.hbm_to_vmem [thread:$0]  (!%p707_p11), %s705_s19, 256, %s711_s24, %s122_s27  }
  0x47   : > { %p822_p7 = scmp.ne.s32.totalorder %s813_s17, 0 }
  0x48   : > { %s741_s22 = sand.u32 (!%p822_p7), 1, %s571_s10   ;;  %p823_p3 = scmp.ne.s32.totalorder (!%p822_p7), %s811_s15, 0 }
  0x49   : > { %142 = sbr.rel (%p822_p7) target bundleno = 629 (0x275), region = 28  ;;  %s380_s25 = sshll.u32 (!%p822_p7), %s741_s22, 4 }
  0x4a   : > { %s145_s23 = scalar_lea.sflag (!%p822_p7), [#allocation3], %s741_s22  ;;  %s148_s28 = scalar_lea.vmem (!%p822_p7), [#allocation2], %s380_s25 }
  0x50   : > { %554 = dma.done.wait (%p823_p3), %s145_s23, 256  }
  0x51   : > { %556 = vsyncadd (%p823_p3), %s145_s23, 4294967040  ;;  %p824_p11 = scmp.eq.s32.totalorder %s621_s13, 0 }
  0x53   : > { %558 = dma.done.wait (%p824_p11), [#allocation6], 128   ;;  %p825_p4 = pmov %p824_p11 }
  0x54   : > { %v173_v0 = vld [vmem:[%s148_s28] sm:$0xff]  ;;  %v174_v1 = vld [vmem:[%s148_s28 + $0x8] sm:$0xff]  ;;  %v583_v10 = vmov 0.0   ;;  %vm200_vm0 = vcmask 64512   ;;  %s172_s15 = scalar_lea.vmem [#allocation7], %s380_s25  ;;  %s390_s19 = sshll.u32 %s621_s13, 8 }
  0x55   : > { %560 = vsyncadd (%p825_p4), [#allocation6], 4294967168  ;;  %v175_v2 = vadd.f32 %v174_v1, %v173_v0  ;;  %268 = vmatprep.mubr.f32.mxu0 %v583_v10  ;;  %v195_v23 = vld [vmem:[#allocation5] sm:$0xff]  ;;  %s292_s17 = sshll.u32 %s172_s15, 4  ;;  %s763_s27 = scalar_lea.hbm %s807_s2, %s390_s19  ;;  %s758_s17 = int_to_ptr.vmem [resolvable:$true] %s292_s17 }
  0x56   : > { %s278_s29 = scalar_lea.sflag [#allocation4], %s741_s22  ;;  %s509_s30 = scalar_lea.vmem %s758_s17, 256 }
  0x57   : > { %176 = vadd.xlane.f32.xlu0 %v175_v2  ;;  %p510_p6 = scmp.ne.s32.totalorder %s758_s17, %s509_s30  ;;  %s584_s13 = smov [#allocation7]  }
  0x58   : > { %s513_s3 = sshll.u32 %s584_s13, 4  ;;  %s514_s3 = int_to_ptr.vmem [resolvable:$false] %s513_s3 }
  0x59   : > { %p511_p9 = pnand %p510_p6, %p692_p8  ;;  %s515_s4 = scalar_lea.vmem %s514_s3, 512 }
  0x5a   : > { %p516_p13 = scmp.lt.s32.totalorder %s758_s17, %s514_s3  ;;  %p517_p0 = scmp.lt.s32.totalorder %s515_s4, %s509_s30 }
  0x5b   : > { %p512_p12 = pneg %p511_p9 }
  0x5c   : > { %p518_p5 = por %p517_p0, %p516_p13 }
  0x5e   : > { %p519_p10 = pnand %p518_p5, %p512_p12 }
  0xe4   : > { %v177_v3 = vpop.xlane.xlu0 %176 }
  0xe5   : > { %v179_v4 = vmul.f32 0.00390625, %v177_v3 }
  0xe7   : > { %v180_v5 = vsub.f32 %v173_v0, %v179_v4  ;;  %v181_v6 = vsub.f32 %v174_v1, %v179_v4  ;;  %v188_v11 = vmul.f32 %v179_v4, %v179_v4 }
  0xe9   : > { %v182_v7 = vmul.f32 %v180_v5, %v180_v5  ;;  %v183_v8 = vmul.f32 %v181_v6, %v181_v6  ;;  %v189_v12 = vmul.f32 0.0, %v188_v11  ;;  %v197_v18 = vmax.f32 %v181_v6, 0.0 }
  0xea   : > { %v196_v19 = vmax.f32 %v180_v5, 0.0 }
  0xeb   : > { %v184_v9 = vadd.f32 %v183_v8, %v182_v7 }
  0xed   : > { %185 = vadd.xlane.f32.xlu0 %v184_v9 }
 0x17a   : > { %v186_v13 = vpop.xlane.xlu0 %185 }
 0x17b   : > { %v190_v14 = vsub.f32 %v186_v13, %v189_v12 }
 0x17d   : > { %v191_v15 = vmul.f32 0.00390625, %v190_v14 }
 0x17f   : > { %v192_v16 = vmax.f32 %v191_v15, 0.0 }
 0x181   : > { %v193_v17 = vadd.f32 1e-05, %v192_v16 }
 0x183   : > { %449 = vrsqrt.f32 %v193_v17 }
 0x18d   : > { %v450_v20 = vpop.eup %449 }
 0x18e   : > { %v199_v21 = vmul.f32 %v450_v20, %v197_v18  ;;  %v198_v22 = vmul.f32 %v450_v20, %v196_v19 }
 0x190   : > { %204 = vmatprep.subr.mxu0 %v199_v21 }
 0x191   : > { %205 = vmatpush1.msra.mxu0 %v198_v22 }
 0x192   : > { %383 = vmatmul.mubr.msk.f32.vlgmr.msra.gmra.mrb[0].mxu0 %vm200_vm0, %v195_v23 }
 0x265   : > { %v270_v24 = vpop.f32.mrb[0].mxu0 }
 0x266   : > { %275 = vst [vmem:[%s172_s15] sm:$0xff] %v270_v24  ;;  %v272_v25 = vpop.f32.mrb[1].mxu0 }
 0x267   : > { %276 = vst [vmem:[%s172_s15 + $0x8] sm:$0xff] %v272_v25 }
 0x268   : > { %522 = shalt.err (!%p519_p10)
}
 0x269   : > { %s523_s5 = scalar_lea.hbm %s763_s27, 256  ;;  %s527_s18 = scalar_lea.hbm %s807_s2, 512 }
 0x26a   : > { %p524_p1 = scmp.ne.s32.totalorder %s763_s27, %s523_s5  ;;  %p528_p3 = scmp.lt.u32.totalorder %s763_s27, %s807_s2 }
 0x26b   : > { %p529_p11 = scmp.lt.u32.totalorder %s527_s18, %s523_s5  ;;  %p531_p6 = scmp.lt.u32.totalorder %s523_s5, %s763_s27 }
 0x26c   : > { %p525_p2 = pnand %p524_p1, %p692_p8 }
 0x26d   : > { %p530_p4 = por %p529_p11, %p528_p3 }
 0x26e   : > { %p526_p7 = pneg %p525_p2 }
 0x26f   : > { %p532_p9 = por %p531_p6, %p530_p4 }
 0x271   : > { %p533_p12 = pnand %p532_p9, %p526_p7 }
 0x273   : > { %536 = shalt.err (!%p533_p12)
}
 0x274   : > { %397 = dma.vmem_to_hbm [thread:$0]  (%p692_p8), %s758_s17, 256, %s763_s27, %s278_s29  }
 0x275 PF: > { %s304_s25 = sand.u32 1, %s567_s9   ;;  %p826_p13 = scmp.ne.s32.totalorder %s812_s16, 0 }
 0x276   : > { %p827_p0 = scmp.ge.s32.totalorder %s579_s12, 2  ;;  %s305_s23 = scalar_lea.sflag [#allocation4], %s304_s25 }
 0x278   : > { %p408_p5 = pnand %p827_p0, %p826_p13 }
 0x27a   : > { %562 = dma.done.wait (!%p408_p5), %s305_s23, 256  }
 0x27b   : > { %564 = vsyncadd (!%p408_p5), %s305_s23, 4294967040  ;;  %p16_p10 = scmp.ge.s32.totalorder %s648_s20, 4   ;;  %s828_s9 = smov %s571_s10 }
 0x27c   : > { %s829_s10 = smov %s575_s11  ;;  %s830_s11 = smov %s684_s7 }
 0x27d   : > { %s831_s12 = smov %s648_s20  ;;  %18 = sbr.rel (!%p16_p10) target bundleno = 6 (0x6), region = 77 }
 0x284   :  { %310 = vsyncpa [#allocation3], 1 }
 0x285   :  { %312 = vsyncpa [#allocation3 + $0x1], 1 }
 0x286   :  { %313 = vsyncpa [#allocation6], 1 }
 0x287   :  { %314 = vsyncpa [#allocation4], 1 }
 0x288   :  { %316 = vsyncpa [#allocation4 + $0x1], 1 }

</bundles_post_ra>
